<compile_context>
chip_gen: v6e
topology: v6e:2x2x1
jax: 0.10.0
libtpu: 0.0.40
codegen_flags: <defaults>
</compile_context>

<pallas_src>
import functools

import numpy as np
import jax
import jax.numpy as jnp
from jax import lax
from jax.experimental import pallas as pl
from jax.experimental.pallas import tpu as pltpu

_LOG2E = 1.4426950408889634


def _round_up(a, b):
    return (a + b - 1) // b * b


def _default_compute_dtype():
    """bf16 element math only on generations with bf16 VPU/EUP (v6e / v7x)."""
    try:
        kind = jax.devices()[0].device_kind.lower()
    except Exception:
        return jnp.float32
    if ("v6" in kind) or ("v7" in kind) or ("7x" in kind):
        return jnp.bfloat16
    return jnp.float32


def _pick_tiling(n, hw, max_tile_hw):
    """Pick a lane-dense spatial tile.

    Prefers multiple-of-128 divisors of hw (no pad / no final slice) and makes
    sure the total grid has >= 2 programs when possible (v7x megacore).
    Returns (tile_hw, hw_pad)."""
    max_tile_hw = max(128, _round_up(max_tile_hw, 128))
    if hw % 128 == 0:
        best = 128
        t = 128
        while t <= min(hw, max_tile_hw):
            if hw % t == 0:
                best = t
            t += 128
        if n * (hw // best) < 2:  # create >= 2 programs for the 2-TC case
            t = best - 128
            while t >= 128:
                if hw % t == 0 and (hw // t) >= 2:
                    best = t
                    break
                t -= 128
        return best, hw
    # Irregular spatial size: pad up to a multiple of the tile (slow path).
    tile = min(_round_up(hw, 128), max_tile_hw)
    return tile, _round_up(hw, tile)


def _make_kernel(c_in, c_out, tile_hw, unroll):
    # Keep the register-carried accumulator within ~16 f32 vregs; for larger
    # tiles accumulate directly into the VMEM output block instead (vld/vst
    # slots have slack while the EUP binds).
    use_reg_acc = c_out * tile_hw <= 16 * 1024

    def kernel(x_ref, ct_ref, ni_ref, hist_ref):
        # x_ref:    (C_in,  TILE_HW)    one batch element, one spatial tile
        # ct_ref:   (C_in,  C_out, 1)   bin centers (transposed)
        # ni_ref:   (C_in,  C_out, 1)   -log2(e) / (2 * width^2) (transposed)
        # hist_ref: (C_out, TILE_HW)    f32 output block
        def term(j):
            xj = x_ref[pl.ds(j, 1), :]          # (1, TILE_HW) sublane slice
            cj = ct_ref[j]                      # (C_out, 1)   leading-axis slice
            nj = ni_ref[j]                      # (C_out, 1)
            diff = xj - cj                      # (C_out, TILE_HW)
            return jnp.exp2(diff * diff * nj)   # EUP exp2, log2(e) pre-folded

        if use_reg_acc:
            def body(j, acc):
                return acc + term(j).astype(jnp.float32)
            acc0 = jnp.zeros((c_out, tile_hw), jnp.float32)
            hist_ref[...] = lax.fori_loop(0, c_in, body, acc0, unroll=unroll)
        else:
            hist_ref[...] = jnp.zeros(hist_ref.shape, hist_ref.dtype)
            def body(j, carry):
                hist_ref[...] += term(j).astype(hist_ref.dtype)
                return carry
            lax.fori_loop(0, c_in, body, 0, unroll=unroll)

    return kernel


@functools.partial(jax.jit, static_argnames=("compute_dtype", "max_tile_hw"))
def _local_histogram_impl(x, bin_centers, bin_widths, *, compute_dtype, max_tile_hw):
    n, c_in, h, w = x.shape
    c_out = bin_centers.shape[0]
    hw = h * w

    # Pad the bin axis to a sublane multiple (unmasked vreg ops / stores).
    c_out_pad = _round_up(c_out, 8)

    # VMEM-aware tile cap (conservative vs v7x's 32 MiB scoped default):
    # double-buffered input + output blocks per unit of TILE_HW.
    in_bytes = np.dtype(compute_dtype).itemsize
    per_hw_bytes = 2 * (c_in * in_bytes + c_out_pad * 4)
    budget = 24 * 1024 * 1024
    cap = max(128, (budget // per_hw_bytes) // 128 * 128)
    tile_hw, hw_pad = _pick_tiling(n, hw, min(int(max_tile_hw), cap))

    x_flat = x.reshape(n, c_in, hw).astype(compute_dtype)
    if hw_pad != hw:
        # Slow path only when HW is not a multiple of 128.
        x_flat = jnp.pad(x_flat, ((0, 0), (0, 0), (0, hw_pad - hw)))

    centers = bin_centers.astype(jnp.float32)
    widths = bin_widths.astype(jnp.float32)
    if c_out_pad != c_out:
        centers = jnp.pad(centers, ((0, c_out_pad - c_out), (0, 0)))
        widths = jnp.pad(widths, ((0, c_out_pad - c_out), (0, 0)),
                         constant_values=1.0)  # avoid 1/0 in padded bins

    # Pre-transpose to (C_in, C_out, 1) so the per-channel access is a cheap
    # leading-axis slice; pre-fold -log2(e)/(2 w^2) for the exp2 path.
    centers_t = jnp.transpose(centers)[..., None].astype(compute_dtype)
    neg_inv_t = jnp.transpose(
        -_LOG2E / (2.0 * jnp.square(widths)))[..., None].astype(compute_dtype)

    unroll = min(max(c_in, 1), 8)
    grid = (n, hw_pad // tile_hw)
    kernel = _make_kernel(c_in, c_out_pad, tile_hw, unroll)

    hist_flat = pl.pallas_call(
        kernel,
        out_shape=jax.ShapeDtypeStruct((n, c_out_pad, hw_pad), jnp.float32),
        grid_spec=pltpu.PrefetchScalarGridSpec(
            num_scalar_prefetch=0,
            grid=grid,
            in_specs=[
                pl.BlockSpec((None, c_in, tile_hw), lambda b, t: (b, 0, t)),
                pl.BlockSpec((c_in, c_out_pad, 1), lambda b, t: (0, 0, 0)),
                pl.BlockSpec((c_in, c_out_pad, 1), lambda b, t: (0, 0, 0)),
            ],
            out_specs=pl.BlockSpec((None, c_out_pad, tile_hw),
                                   lambda b, t: (b, 0, t)),
        ),
        compiler_params=pltpu.CompilerParams(
            dimension_semantics=("parallel", "parallel"),
            vmem_limit_bytes=32 * 1024 * 1024,
        ),
    )(x_flat, centers_t, neg_inv_t)

    hist = hist_flat[:, :c_out, :hw].reshape(n, c_out, h, w)
    return x, hist


def local_histogram_layer1(x, bin_centers, bin_widths, *,
                           compute_dtype=None, max_tile_hw=4096):
    """x: (N, C_in, H, W).  Returns (x, hist) with hist: (N, C_out, H, W) f32."""
    if compute_dtype is None:
        compute_dtype = _default_compute_dtype()
    return _local_histogram_impl(
        x, bin_centers, bin_widths,
        compute_dtype=np.dtype(compute_dtype), max_tile_hw=int(max_tile_hw))


def _reference(x, centers, widths, compute_dtype=jnp.float32):
    """Pure-JAX reference of the PyTorch double loop, with optional reduced
    element-math precision to mirror the kernel's bf16 path."""
    cd = compute_dtype
    neg_inv = (-_LOG2E / (2.0 * jnp.square(widths.astype(jnp.float32)))).astype(cd)
    xb = x.astype(cd)[:, None, :, :, :]                  # (N,1,Ci,H,W)
    cb = centers.astype(cd)[None, :, :, None, None]      # (1,Co,Ci,1,1)
    nb = neg_inv[None, :, :, None, None]
    diff = xb - cb
    term = jnp.exp2(diff * diff * nb).astype(jnp.float32)
    return jnp.sum(term, axis=2)                         # (N,Co,H,W)


if __name__ == "__main__":
    key = jax.random.PRNGKey(0)
    k_x, k_c, k_w = jax.random.split(key, 3)

    N, C_in, C_out, H, W = 2, 4, 8, 16, 16
    x = jax.random.normal(k_x, (N, C_in, H, W), dtype=jnp.float32)
    # Matches nn.Parameter(torch.randn(out_channels, in_channels)) shapes.
    bin_centers = jax.random.normal(k_c, (C_out, C_in), dtype=jnp.float32)
    bin_widths = jax.random.normal(k_w, (C_out, C_in), dtype=jnp.float32)

    ref_f32 = _reference(x, bin_centers, bin_widths, jnp.float32)

    # Full-precision path (all generations): tight check against the reference.
    out, hist = local_histogram_layer1(x, bin_centers, bin_widths,
                                       compute_dtype=jnp.float32)
    out = jax.block_until_ready(out)
    hist = jax.block_until_ready(hist)
    assert out.shape == x.shape and out.dtype == x.dtype
    assert bool(jnp.allclose(out, x)), "passthrough mismatch"
    assert hist.shape == (N, C_out, H, W)
    assert bool(jnp.allclose(hist, ref_f32, atol=1e-4, rtol=1e-4)), "hist mismatch (f32)"

    # Generation-default path (bf16 element math on v6e/v7x, f32 elsewhere),
    # checked against a matched-precision reference with loose tolerance.
    cd = _default_compute_dtype()
    out2, hist2 = local_histogram_layer1(x, bin_centers, bin_widths)
    hist2 = jax.block_until_ready(hist2)
    ref_cd = _reference(x, bin_centers, bin_widths, cd)
    assert bool(jnp.allclose(hist2, ref_cd, atol=1e-1, rtol=1e-1)), \
        "hist mismatch (generation-default path)"

    print("KERNEL_OK")
</pallas_src>

<mosaic_0001>
module attributes {stable_mosaic.version = 11 : i64} {
  func.func @kernel(%arg0: i32, %arg1: i32, %arg2: memref<1x4x256xf32, #tpu.memory_space<vmem>>, %arg3: memref<4x8x1xf32, #tpu.memory_space<vmem>>, %arg4: memref<4x8x1xf32, #tpu.memory_space<vmem>>, %arg5: memref<1x8x256xf32, #tpu.memory_space<vmem>>) attributes {dimension_semantics = [#tpu.dimension_semantics<parallel>, #tpu.dimension_semantics<parallel>], iteration_bounds = array<i64: 2, 1>, scalar_prefetch = 0 : i64, scratch_operands = 0 : i64, tpu.core_type = #tpu.core_type<tc>, window_params = [{transform_indices = @transform_0, window_bounds = array<i64: 1, 4, 256>}, {pipeline_mode = #tpu.pipeline_mode<synchronous>, transform_indices = @transform_1, window_bounds = array<i64: 4, 8, 1>}, {pipeline_mode = #tpu.pipeline_mode<synchronous>, transform_indices = @transform_2, window_bounds = array<i64: 4, 8, 1>}, {transform_indices = @transform_3, window_bounds = array<i64: 1, 8, 256>}]} {
    %cst = arith.constant 0.000000e+00 : f32
    %0 = vector.broadcast %cst : f32 to vector<8x256xf32>
    %c0_i32 = arith.constant 0 : i32
    %c0 = arith.constant 0 : index
    %1 = arith.index_cast %c0_i32 : i32 to index
    %c0_0 = arith.constant 0 : index
    %2 = vector.load %arg2[%c0, %1, %c0_0] : memref<1x4x256xf32, #tpu.memory_space<vmem>>, vector<1x1x256xf32>
    %3 = vector.shape_cast %2 : vector<1x1x256xf32> to vector<1x256xf32>
    %4 = arith.index_cast %c0_i32 : i32 to index
    %c0_1 = arith.constant 0 : index
    %c0_2 = arith.constant 0 : index
    %5 = vector.load %arg3[%4, %c0_1, %c0_2] : memref<4x8x1xf32, #tpu.memory_space<vmem>>, vector<1x8x1xf32>
    %6 = vector.shape_cast %5 : vector<1x8x1xf32> to vector<8x1xf32>
    %7 = arith.index_cast %c0_i32 : i32 to index
    %c0_3 = arith.constant 0 : index
    %c0_4 = arith.constant 0 : index
    %8 = vector.load %arg4[%7, %c0_3, %c0_4] : memref<4x8x1xf32, #tpu.memory_space<vmem>>, vector<1x8x1xf32>
    %9 = vector.shape_cast %8 : vector<1x8x1xf32> to vector<8x1xf32>
    %10 = vector.broadcast %3 : vector<1x256xf32> to vector<8x256xf32>
    %11 = vector.broadcast %6 : vector<8x1xf32> to vector<8x256xf32>
    %12 = arith.subf %10, %11 : vector<8x256xf32>
    %13 = arith.mulf %12, %12 : vector<8x256xf32>
    %14 = vector.broadcast %9 : vector<8x1xf32> to vector<8x256xf32>
    %15 = arith.mulf %13, %14 : vector<8x256xf32>
    %16 = math.exp2 %15 : vector<8x256xf32>
    %17 = arith.addf %0, %16 : vector<8x256xf32>
    %c1_i32 = arith.constant 1 : i32
    %c0_5 = arith.constant 0 : index
    %18 = arith.index_cast %c1_i32 : i32 to index
    %c0_6 = arith.constant 0 : index
    %19 = vector.load %arg2[%c0_5, %18, %c0_6] : memref<1x4x256xf32, #tpu.memory_space<vmem>>, vector<1x1x256xf32>
    %20 = vector.shape_cast %19 : vector<1x1x256xf32> to vector<1x256xf32>
    %21 = arith.index_cast %c1_i32 : i32 to index
    %c0_7 = arith.constant 0 : index
    %c0_8 = arith.constant 0 : index
    %22 = vector.load %arg3[%21, %c0_7, %c0_8] : memref<4x8x1xf32, #tpu.memory_space<vmem>>, vector<1x8x1xf32>
    %23 = vector.shape_cast %22 : vector<1x8x1xf32> to vector<8x1xf32>
    %24 = arith.index_cast %c1_i32 : i32 to index
    %c0_9 = arith.constant 0 : index
    %c0_10 = arith.constant 0 : index
    %25 = vector.load %arg4[%24, %c0_9, %c0_10] : memref<4x8x1xf32, #tpu.memory_space<vmem>>, vector<1x8x1xf32>
    %26 = vector.shape_cast %25 : vector<1x8x1xf32> to vector<8x1xf32>
    %27 = vector.broadcast %20 : vector<1x256xf32> to vector<8x256xf32>
    %28 = vector.broadcast %23 : vector<8x1xf32> to vector<8x256xf32>
    %29 = arith.subf %27, %28 : vector<8x256xf32>
    %30 = arith.mulf %29, %29 : vector<8x256xf32>
    %31 = vector.broadcast %26 : vector<8x1xf32> to vector<8x256xf32>
    %32 = arith.mulf %30, %31 : vector<8x256xf32>
    %33 = math.exp2 %32 : vector<8x256xf32>
    %34 = arith.addf %17, %33 : vector<8x256xf32>
    %c2_i32 = arith.constant 2 : i32
    %c0_11 = arith.constant 0 : index
    %35 = arith.index_cast %c2_i32 : i32 to index
    %c0_12 = arith.constant 0 : index
    %36 = vector.load %arg2[%c0_11, %35, %c0_12] : memref<1x4x256xf32, #tpu.memory_space<vmem>>, vector<1x1x256xf32>
    %37 = vector.shape_cast %36 : vector<1x1x256xf32> to vector<1x256xf32>
    %38 = arith.index_cast %c2_i32 : i32 to index
    %c0_13 = arith.constant 0 : index
    %c0_14 = arith.constant 0 : index
    %39 = vector.load %arg3[%38, %c0_13, %c0_14] : memref<4x8x1xf32, #tpu.memory_space<vmem>>, vector<1x8x1xf32>
    %40 = vector.shape_cast %39 : vector<1x8x1xf32> to vector<8x1xf32>
    %41 = arith.index_cast %c2_i32 : i32 to index
    %c0_15 = arith.constant 0 : index
    %c0_16 = arith.constant 0 : index
    %42 = vector.load %arg4[%41, %c0_15, %c0_16] : memref<4x8x1xf32, #tpu.memory_space<vmem>>, vector<1x8x1xf32>
    %43 = vector.shape_cast %42 : vector<1x8x1xf32> to vector<8x1xf32>
    %44 = vector.broadcast %37 : vector<1x256xf32> to vector<8x256xf32>
    %45 = vector.broadcast %40 : vector<8x1xf32> to vector<8x256xf32>
    %46 = arith.subf %44, %45 : vector<8x256xf32>
    %47 = arith.mulf %46, %46 : vector<8x256xf32>
    %48 = vector.broadcast %43 : vector<8x1xf32> to vector<8x256xf32>
    %49 = arith.mulf %47, %48 : vector<8x256xf32>
    %50 = math.exp2 %49 : vector<8x256xf32>
    %51 = arith.addf %34, %50 : vector<8x256xf32>
    %c3_i32 = arith.constant 3 : i32
    %c0_17 = arith.constant 0 : index
    %52 = arith.index_cast %c3_i32 : i32 to index
    %c0_18 = arith.constant 0 : index
    %53 = vector.load %arg2[%c0_17, %52, %c0_18] : memref<1x4x256xf32, #tpu.memory_space<vmem>>, vector<1x1x256xf32>
    %54 = vector.shape_cast %53 : vector<1x1x256xf32> to vector<1x256xf32>
    %55 = arith.index_cast %c3_i32 : i32 to index
    %c0_19 = arith.constant 0 : index
    %c0_20 = arith.constant 0 : index
    %56 = vector.load %arg3[%55, %c0_19, %c0_20] : memref<4x8x1xf32, #tpu.memory_space<vmem>>, vector<1x8x1xf32>
    %57 = vector.shape_cast %56 : vector<1x8x1xf32> to vector<8x1xf32>
    %58 = arith.index_cast %c3_i32 : i32 to index
    %c0_21 = arith.constant 0 : index
    %c0_22 = arith.constant 0 : index
    %59 = vector.load %arg4[%58, %c0_21, %c0_22] : memref<4x8x1xf32, #tpu.memory_space<vmem>>, vector<1x8x1xf32>
    %60 = vector.shape_cast %59 : vector<1x8x1xf32> to vector<8x1xf32>
    %61 = vector.broadcast %54 : vector<1x256xf32> to vector<8x256xf32>
    %62 = vector.broadcast %57 : vector<8x1xf32> to vector<8x256xf32>
    %63 = arith.subf %61, %62 : vector<8x256xf32>
    %64 = arith.mulf %63, %63 : vector<8x256xf32>
    %65 = vector.broadcast %60 : vector<8x1xf32> to vector<8x256xf32>
    %66 = arith.mulf %64, %65 : vector<8x256xf32>
    %67 = math.exp2 %66 : vector<8x256xf32>
    %68 = arith.addf %51, %67 : vector<8x256xf32>
    %c4_i32 = arith.constant 4 : i32
    %c0_23 = arith.constant 0 : index
    %c0_24 = arith.constant 0 : index
    %c0_25 = arith.constant 0 : index
    %69 = vector.load %arg5[%c0_23, %c0_24, %c0_25] : memref<1x8x256xf32, #tpu.memory_space<vmem>>, vector<1x8x256xf32>
    %70 = vector.shape_cast %69 : vector<1x8x256xf32> to vector<8x256xf32>
    %71 = vector.shape_cast %68 : vector<8x256xf32> to vector<1x8x256xf32>
    tpu.vector_store %arg5[%c0_23, %c0_24, %c0_25], %71 {strides = array<i32>} : memref<1x8x256xf32, #tpu.memory_space<vmem>>, vector<1x8x256xf32>,
    return
  }
  func.func @transform_0(%arg0: i32, %arg1: i32) -> (i32, i32, i32) {
    %c0_i32 = arith.constant 0 : i32
    %c0_i32_0 = arith.constant 0 : i32
    return %arg0, %c0_i32, %arg1 : i32, i32, i32
  }
  func.func @transform_1(%arg0: i32, %arg1: i32) -> (i32, i32, i32) {
    %c0_i32 = arith.constant 0 : i32
    %c0_i32_0 = arith.constant 0 : i32
    %c0_i32_1 = arith.constant 0 : i32
    %c0_i32_2 = arith.constant 0 : i32
    return %c0_i32, %c0_i32_0, %c0_i32_1 : i32, i32, i32
  }
  func.func @transform_2(%arg0: i32, %arg1: i32) -> (i32, i32, i32) {
    %c0_i32 = arith.constant 0 : i32
    %c0_i32_0 = arith.constant 0 : i32
    %c0_i32_1 = arith.constant 0 : i32
    %c0_i32_2 = arith.constant 0 : i32
    return %c0_i32, %c0_i32_0, %c0_i32_1 : i32, i32, i32
  }
  func.func @transform_3(%arg0: i32, %arg1: i32) -> (i32, i32, i32) {
    %c0_i32 = arith.constant 0 : i32
    %c0_i32_0 = arith.constant 0 : i32
    return %arg0, %c0_i32, %arg1 : i32, i32, i32
  }
}

</mosaic_0001>

<bundles_post_ra>
// kernel: _local_histogram_impl.1
= control target key start
LH: loop header
LB: loop body
LE: loop exit
PB: predicated region body
PF: predicated region fallthrough
CT: control target
= control target key end

     0   :  { %s554_s12 = smov 0   ;;  %s556_s13 = smov 0   ;;  %s619_s0 = inlined_call_operand.vmem [shape: f32[2,4,256], index: 0, kind: input, shape index: {}]   ;;  %s620_s1 = inlined_call_operand.vmem [shape: f32[4,8,1], index: 1, kind: input, shape index: {}]   ;;  %s621_s2 = inlined_call_operand.vmem [shape: f32[4,8,1], index: 2, kind: input, shape index: {}]   ;;  %s622_s3 = inlined_call_operand.vmem [shape: f32[2,8,256], index: 3, kind: output, shape index: {}]  }
   0x1   :  { %s558_s14 = smov 0  }
   0x2 LB: > { %s25_s15 = sadd.s32 1, %s527_s13  ;;  %p448_p0 = scmp.ge.s32.totalorder %s531_s14, 1  ;;  %s531_s14 = sphi %s558_s14, %s13_s14   ;;  %s527_s13 = sphi %s556_s13, %s624_s13   ;;  %s523_s12 = sphi %s554_s12, %s623_s12  }
   0x3   : > { %p27_p1 = scmp.ge.s32.totalorder %s25_s15, 2  ;;  %p158_p2 = scmp.lt.s32.totalorder %s531_s14, 3 }
   0x5   : > { %s626_s15 = smov (%p27_p1, %s25_s15), 0  ;;  %p159_p3 = pnand %p448_p0, %p158_p2 }
   0x6   : > { %p191_p4 = scmp.lt.s32.totalorder (!%p159_p3), %s523_s12, 1 }
   0x7   : > { %162 = sbr.rel (%p159_p3) target bundleno = 172 (0xac), region = 32 }
   0xc   : > { %v457_v0 = vld [vmem:[%s620_s1 + $0x10] sm:$0xff]  ;;  %v211_v1 = vld [vmem:[%s620_s1] sm:$0xff]  ;;  %v533_v2 = vmov 0   ;;  %v454_v4 = vld [vmem:[%s620_s1 + $0x8] sm:$0xff]  ;;  %s628_s12 = smov (!%p191_p4, %s523_s12), 1  ;;  %v214_v9 = vlaneseq }
   0xd   : > { %492 = vset.pattern.permute.xlu1 %v533_v2  ;;  %491 = vset.pattern.permute.xlu0 %v533_v2  ;;  %v212_v3 = vld [vmem:[%s621_s2] sm:$0xff]  ;;  %v460_v5 = vld [vmem:[%s620_s1 + $0x18] sm:$0xff]  ;;  %v455_v6 = vld [vmem:[%s621_s2 + $0x8] sm:$0xff]  ;;  %s464_s5 = sshll.u32 %s628_s12, 3  ;;  %s465_s9 = sshll.u32 %s628_s12, 4 }
   0xe   : > { %300 = vperm.xlu1 %492, %v457_v0   ;;  %226 = vperm.xlu0 %491, %v211_v1   ;;  %v461_v7 = vld [vmem:[%s621_s2 + $0x18] sm:$0xff]  ;;  %v458_v8 = vld [vmem:[%s621_s2 + $0x10] sm:$0xff]  ;;  %v215_v10 = vshrl.u32 %v214_v9, 7  ;;  %s198_s8 = scalar_lea.vmem %s619_s0, %s464_s5  ;;  %s208_s16 = scalar_lea.vmem %s622_s3, %s465_s9 }
   0xf   : > { %v210_v13 = vld [vmem:[%s198_s8] ss:$4 sm:$0x3]  ;;  %v453_v14 = vld [vmem:[%s198_s8 + $0x1] ss:$4 sm:$0x3] }
  0x10   : > { %v216_v11 = vsub.s32 0, %v215_v10  ;;  %v220_v12 = vsub.s32 1, %v215_v10  ;;  %v456_v17 = vld [vmem:[%s198_s8 + $0x2] ss:$4 sm:$0x3] }
  0x11   : > { %v459_v22 = vld [vmem:[%s198_s8 + $0x3] ss:$4 sm:$0x3] }
  0x12   : > { %235 = vperm.xlu1 %492, %v212_v3   ;;  %263 = vperm.xlu0 %491, %v454_v4   ;;  %v217_v15 = vrot.slane %v210_v13, %v216_v11  ;;  %v221_v19 = vrot.slane %v210_v13, %v220_v12  ;;  %v254_v20 = vrot.slane %v453_v14, %v216_v11 }
  0x13   : > { %v258_v21 = vrot.slane %v453_v14, %v220_v12  ;;  %v291_v23 = vrot.slane %v456_v17, %v216_v11  ;;  %v295_v25 = vrot.slane %v456_v17, %v220_v12  ;;  %v328_v31 = vrot.slane %v459_v22, %v216_v11 }
  0x14   : > { %v332_v32 = vrot.slane %v459_v22, %v220_v12 }
  0x16   : > { %337 = vperm.xlu1 %492, %v460_v5   ;;  %272 = vperm.xlu0 %491, %v455_v6  }
  0x1a   : > { %346 = vperm.xlu1 %492, %v461_v7   ;;  %309 = vperm.xlu0 %491, %v458_v8  }
  0x89   : > { %v301_v16 = vpop.permute.xlu1 %300  ;;  %v227_v18 = vpop.permute.xlu0 %226 }
  0x8a   : > { %v229_v24 = vsub.f32 %v217_v15, %v227_v18  ;;  %v230_v26 = vsub.f32 %v221_v19, %v227_v18  ;;  %v303_v33 = vsub.f32 %v291_v23, %v301_v16  ;;  %v304_v37 = vsub.f32 %v295_v25, %v301_v16 }
  0x8c   : > { %v231_v34 = vmul.f32 %v229_v24, %v229_v24  ;;  %v232_v38 = vmul.f32 %v230_v26, %v230_v26  ;;  %v305_v45 = vmul.f32 %v303_v33, %v303_v33  ;;  %v306_v48 = vmul.f32 %v304_v37, %v304_v37 }
  0x8d   : > { %v236_v27 = vpop.permute.xlu1 %235  ;;  %v264_v28 = vpop.permute.xlu0 %263 }
  0x8e   : > { %v266_v29 = vsub.f32 %v254_v20, %v264_v28  ;;  %v267_v30 = vsub.f32 %v258_v21, %v264_v28  ;;  %v238_v46 = vmul.f32 %v236_v27, %v231_v34  ;;  %v239_v49 = vmul.f32 %v236_v27, %v232_v38 }
  0x90   : > { %v268_v35 = vmul.f32 %v266_v29, %v266_v29  ;;  %v269_v36 = vmul.f32 %v267_v30, %v267_v30 }
  0x91   : > { %v338_v39 = vpop.permute.xlu1 %337  ;;  %v273_v40 = vpop.permute.xlu0 %272 }
  0x92   : > { %v340_v41 = vsub.f32 %v328_v31, %v338_v39  ;;  %v341_v42 = vsub.f32 %v332_v32, %v338_v39  ;;  %v275_v43 = vmul.f32 %v273_v40, %v268_v35  ;;  %v276_v44 = vmul.f32 %v273_v40, %v269_v36 }
  0x94   : > { %v342_v47 = vmul.f32 %v340_v41, %v340_v41  ;;  %v343_v50 = vmul.f32 %v341_v42, %v341_v42  ;;  %493 = vpow2.f32 %v275_v43 }
  0x95   : > { %v347_v51 = vpop.permute.xlu1 %346  ;;  %v310_v52 = vpop.permute.xlu0 %309  ;;  %495 = vpow2.f32 %v276_v44 }
  0x96   : > { %v312_v53 = vmul.f32 %v310_v52, %v305_v45  ;;  %v313_v54 = vmul.f32 %v310_v52, %v306_v48  ;;  %497 = vpow2.f32 %v238_v46  ;;  %v349_v55 = vmul.f32 %v347_v51, %v342_v47 }
  0x97   : > { %499 = vpow2.f32 %v239_v49  ;;  %v350_v56 = vmul.f32 %v347_v51, %v343_v50 }
  0x98   : > { %501 = vpow2.f32 %v312_v53 }
  0x99   : > { %503 = vpow2.f32 %v313_v54 }
  0x9a   : > { %505 = vpow2.f32 %v349_v55 }
  0x9b   : > { %507 = vpow2.f32 %v350_v56 }
  0xa1   : > { %v494_v57 = vpop.eup %493 }
  0xa2   : > { %v496_v58 = vpop.eup %495 }
  0xa3   : > { %v498_v59 = vpop.eup %497 }
  0xa4   : > { %v500_v60 = vpop.eup %499  ;;  %v279_v61 = vadd.f32 %v498_v59, %v494_v57 }
  0xa5   : > { %v502_v62 = vpop.eup %501  ;;  %v280_v63 = vadd.f32 %v500_v60, %v496_v58 }
  0xa6   : > { %v504_v0 = vpop.eup %503  ;;  %v316_v1 = vadd.f32 %v502_v62, %v279_v61 }
  0xa7   : > { %v506_v2 = vpop.eup %505  ;;  %v317_v3 = vadd.f32 %v504_v0, %v280_v63 }
  0xa8   : > { %v508_v4 = vpop.eup %507  ;;  %v353_v5 = vadd.f32 %v506_v2, %v316_v1 }
  0xa9   : > { %v354_v6 = vadd.f32 %v508_v4, %v317_v3 }
  0xaa   : > { %355 = vst [vmem:[%s208_s16] sm:$0xff] %v353_v5 }
  0xab   : > { %356 = vst [vmem:[%s208_s16 + $0x8] sm:$0xff] %v354_v6 }
  0xac PF: > { %s13_s14 = sadd.s32 1, %s531_s14   ;;  %s623_s12 = smov %s527_s13 }
  0xad   : > { %p10_p5 = scmp.ge.s32.totalorder %s13_s14, 4   ;;  %s624_s13 = smov %s626_s15 }
  0xaf   :  { %12 = sbr.rel (!%p10_p5) target bundleno = 2 (0x2), region = 71 }

</bundles_post_ra>
